<compile_context>
chip_gen: v5e
topology: v5e:2x2
jax: 0.10.0
libtpu: 0.0.40
codegen_flags: <defaults>
</compile_context>

<pallas_src>
import functools

import jax
import jax.numpy as jnp
from jax import lax
from jax.experimental import pallas as pl
from jax.experimental.pallas import tpu as pltpu


def _embeddings_kernel(ids_ref,            # SMEM: (N,) int32 word ids (scalar prefetch)
                       wtab_hbm,           # HBM:  (V, H_pad) word table (pl.ANY)
                       pos_ref,            # VMEM: (S, H_pad) position rows (resident)
                       gamma_ref,          # VMEM: (1, H_pad) (resident)
                       beta_ref,           # VMEM: (1, H_pad) (resident)
                       out_ref,            # VMEM: (tm, H_pad) output tile
                       wrows,              # VMEM scratch: (2*tm, H_pad) gathered rows
                       sems,               # DMA semaphores: (2,) one per buffer slot
                       *, eps, tm, hidden, seq_len):
    b = pl.program_id(0)                   # batch row ("parallel")
    j = pl.program_id(1)                   # seq tile   ("arbitrary", carries state)
    nj = pl.num_programs(1)
    slot = j % 2
    other = 1 - slot

    def start_tile(tile_j, dst_slot):
        base = b * seq_len + tile_j * tm
        @pl.loop(0, tm)
        def _(r):
            wid = ids_ref[base + r]
            pltpu.make_async_copy(wtab_hbm.at[wid],
                                  wrows.at[dst_slot * tm + r],
                                  sems.at[dst_slot]).start()

    # Prologue once per batch row (inner index 0 on every core, megacore safe):
    # fetch this tile into the current slot.
    @pl.when(j == 0)
    def _():
        start_tile(0, 0)

    # Prefetch next tile's rows into the other slot; overlaps this tile's
    # LayerNorm compute and the auto-pipelined output writeback.
    @pl.when(j + 1 < nj)
    def _():
        start_tile(j + 1, other)

    # Wait for this tile's rows (descriptors exactly match the started copies).
    base = b * seq_len + j * tm
    @pl.loop(0, tm)
    def _(r):
        wid = ids_ref[base + r]
        pltpu.make_async_copy(wtab_hbm.at[wid],
                              wrows.at[slot * tm + r],
                              sems.at[slot]).wait()

    # words + positions, LayerNorm in f32 regardless of table dtype.
    row0 = pl.multiple_of(slot * tm, tm)
    w = wrows[pl.ds(row0, tm), :].astype(jnp.float32)
    p0 = pl.multiple_of(j * tm, tm)
    p = pos_ref[pl.ds(p0, tm), :].astype(jnp.float32)
    x = w + p                                   # padded columns are exactly 0

    h_pad = x.shape[-1]
    inv_h = jnp.float32(1.0 / hidden)
    u = jnp.sum(x, axis=-1, keepdims=True) * inv_h        # zero padding -> true mean
    d = x - u
    if h_pad != hidden:
        lane = lax.broadcasted_iota(jnp.int32, x.shape, 1)
        dsq = jnp.where(lane < hidden, d * d, 0.0)        # mask pad cols out of variance
    else:
        dsq = d * d
    s = jnp.sum(dsq, axis=-1, keepdims=True) * inv_h      # biased variance
    xn = d * lax.rsqrt(s + eps)                           # EUP rsqrt
    y = gamma_ref[...].astype(jnp.float32) * xn + beta_ref[...].astype(jnp.float32)
    out_ref[...] = y.astype(out_ref.dtype)


def _pick_row_tile(seq_len, cap=256):
    """Largest multiple of 8 that divides seq_len (<= cap).  cap kept modest so
    double-buffered scratch + output tiles stay well inside v7x's VMEM."""
    assert seq_len % 8 == 0, "sequence length must be a multiple of 8 for this tiling"
    best = 8
    for d in range(8, min(seq_len, cap) + 1, 8):
        if seq_len % d == 0:
            best = d
    return best


def embeddings_forward(input_ids, word_table, pos_table, gamma, beta,
                       *, eps=1e-12, row_tile_cap=256):
    """input_ids: (B, S) int; returns (B, S, H) in word_table's dtype."""
    B, S = input_ids.shape
    V, H = word_table.shape
    P = pos_table.shape[0]
    assert P >= S, "max_position_size must cover the sequence length"
    N = B * S

    # Lane-dense hidden dim: pad to a multiple of 128 (no-op for H % 128 == 0).
    H_pad = ((H + 127) // 128) * 128

    def pad_h(a):
        if H_pad == H:
            return a
        pad = [(0, 0)] * (a.ndim - 1) + [(0, H_pad - H)]
        return jnp.pad(a, pad)

    wtab = pad_h(word_table)
    ptab = pad_h(pos_table[:S])                 # only first S position rows used
    g2 = pad_h(gamma.reshape(1, H))
    b2 = pad_h(beta.reshape(1, H))
    out_dtype = word_table.dtype

    tm = _pick_row_tile(S, cap=row_tile_cap)
    s_blocks = S // tm
    grid = (B, s_blocks)                        # parallel batch axis -> balances 2 TCs on v7x

    # Clamp ids so an out-of-range id can never issue an OOB HBM DMA.
    ids_flat = jnp.clip(input_ids.astype(jnp.int32), 0, V - 1).reshape(N)

    kernel = functools.partial(_embeddings_kernel, eps=eps, tm=tm,
                               hidden=H, seq_len=S)

    # TODO(synk): on v5e/v6e with small vocab the whole word table fits VMEM; a
    # resident-table jnp.take gather variant would remove per-row DMAs there.
    out_flat = pl.pallas_call(
        kernel,
        out_shape=jax.ShapeDtypeStruct((N, H_pad), out_dtype),
        grid_spec=pltpu.PrefetchScalarGridSpec(
            num_scalar_prefetch=1,              # ids -> SMEM
            grid=grid,
            in_specs=[
                pl.BlockSpec(memory_space=pl.ANY),                    # word table (HBM)
                pl.BlockSpec((S, H_pad), lambda b, j, ids: (0, 0)),   # pos rows (resident)
                pl.BlockSpec((1, H_pad), lambda b, j, ids: (0, 0)),   # gamma (resident)
                pl.BlockSpec((1, H_pad), lambda b, j, ids: (0, 0)),   # beta (resident)
            ],
            out_specs=pl.BlockSpec((tm, H_pad),
                                   lambda b, j, ids: (b * s_blocks + j, 0)),
            scratch_shapes=[
                pltpu.VMEM((2 * tm, H_pad), word_table.dtype),  # 2 gather slots
                pltpu.SemaphoreType.DMA((2,)),                  # 1 sem per slot
            ],
        ),
        compiler_params=pltpu.CompilerParams(
            dimension_semantics=("parallel", "arbitrary")),
    )(ids_flat, wtab, ptab, g2, b2)

    out = out_flat[:, :H] if H_pad != H else out_flat
    return out.reshape(B, S, H)


def _reference(input_ids, word_table, pos_table, gamma, beta, eps=1e-12):
    B, S = input_ids.shape
    w = word_table[input_ids].astype(jnp.float32)
    p = pos_table[jnp.arange(S)][None, :, :].astype(jnp.float32)
    x = w + p
    u = jnp.mean(x, axis=-1, keepdims=True)
    s = jnp.mean((x - u) ** 2, axis=-1, keepdims=True)
    xn = (x - u) / jnp.sqrt(s + eps)
    return gamma * xn + beta


if __name__ == "__main__":
    # Module hyper-parameters (small, consistent with the forward pass).
    vocab_size = 20
    hidden_size = 32
    max_position_size = 16
    B, S = 2, 8

    key = jax.random.PRNGKey(0)
    k_w, k_p, k_ids = jax.random.split(key, 3)

    # Deterministic parameter init (nn.Embedding ~ N(0,1); LayerNorm gamma=1, beta=0).
    word_table = jax.random.normal(k_w, (vocab_size, hidden_size), jnp.float32)
    pos_table = jax.random.normal(k_p, (max_position_size, hidden_size), jnp.float32)
    gamma = jnp.ones((hidden_size,), jnp.float32)
    beta = jnp.zeros((hidden_size,), jnp.float32)

    input_ids = jax.random.randint(k_ids, (B, S), 0, vocab_size, jnp.int32)

    out = embeddings_forward(input_ids, word_table, pos_table, gamma, beta)
    out = jax.block_until_ready(out)

    ref = _reference(input_ids, word_table, pos_table, gamma, beta)
    assert out.shape == (B, S, hidden_size)
    assert jnp.allclose(out, ref, atol=1e-5, rtol=1e-5), "mismatch vs reference"

    print("KERNEL_OK")
</pallas_src>

<mosaic_0001>
module attributes {stable_mosaic.version = 11 : i64} {
  func.func @_embeddings_kernel(%arg0: i32, %arg1: i32, %arg2: memref<16xi32, #tpu.memory_space<smem>>, %arg3: memref<20x128xf32, #tpu.memory_space<any>>, %arg4: memref<8x128xf32, #tpu.memory_space<vmem>>, %arg5: memref<1x128xf32, #tpu.memory_space<vmem>>, %arg6: memref<1x128xf32, #tpu.memory_space<vmem>>, %arg7: memref<8x128xf32, #tpu.memory_space<vmem>>, %arg8: memref<16x128xf32, #tpu.memory_space<vmem>>, %arg9: memref<2x!tpu.dma_semaphore, #tpu.memory_space<semaphore_mem>>) attributes {dimension_semantics = [#tpu.dimension_semantics<parallel>, #tpu.dimension_semantics<arbitrary>], iteration_bounds = array<i64: 2, 1>, scalar_prefetch = 1 : i64, scratch_operands = 2 : i64, tpu.core_type = #tpu.core_type<tc>, window_params = [{}, {pipeline_mode = #tpu.pipeline_mode<synchronous>, transform_indices = @transform_1, window_bounds = array<i64: 8, 128>}, {pipeline_mode = #tpu.pipeline_mode<synchronous>, transform_indices = @transform_2, window_bounds = array<i64: 1, 128>}, {pipeline_mode = #tpu.pipeline_mode<synchronous>, transform_indices = @transform_3, window_bounds = array<i64: 1, 128>}, {transform_indices = @transform_4, window_bounds = array<i64: 8, 128>}]} {
    %c2_i32 = arith.constant 2 : i32
    %c0_i32 = arith.constant 0 : i32
    %0 = arith.cmpi eq, %c2_i32, %c0_i32 : i32
    %c1_i32 = arith.constant 1 : i32
    %1 = arith.select %0, %c1_i32, %c2_i32 : i32
    %2 = arith.remsi %arg1, %1 : i32
    %c0_i32_0 = arith.constant 0 : i32
    %3 = arith.cmpi ne, %2, %c0_i32_0 : i32
    %c0_i32_1 = arith.constant 0 : i32
    %4 = arith.cmpi slt, %2, %c0_i32_1 : i32
    %c0_i32_2 = arith.constant 0 : i32
    %5 = arith.cmpi slt, %1, %c0_i32_2 : i32
    %6 = arith.xori %4, %5 : i1
    %7 = arith.andi %6, %3 : i1
    %8 = arith.addi %2, %1 : i32
    %9 = arith.select %7, %8, %2 : i32
    %c1_i32_3 = arith.constant 1 : i32
    %10 = arith.subi %c1_i32_3, %9 : i32
    %c0_i32_4 = arith.constant 0 : i32
    %11 = arith.cmpi eq, %arg1, %c0_i32_4 : i32
    %12 = arith.extui %11 : i1 to i32
    %c0_i32_5 = arith.constant 0 : i32
    %13 = arith.cmpi ne, %12, %c0_i32_5 : i32
    scf.if %13 {
      %c8_i32_28 = arith.constant 8 : i32
      %59 = arith.muli %arg0, %c8_i32_28 : i32
      %c0_i32_29 = arith.constant 0 : i32
      %60 = arith.addi %59, %c0_i32_29 : i32
      %c0_i32_30 = arith.constant 0 : i32
      %c8_i32_31 = arith.constant 8 : i32
      %61 = arith.addi %c0_i32_30, %c8_i32_31 : i32
      %c1_i32_32 = arith.constant 1 : i32
      scf.for %arg10 = %c0_i32_30 to %61 step %c1_i32_32  : i32 {
        %c1_i32_34 = arith.constant 1 : i32
        %62 = arith.muli %arg10, %c1_i32_34 : i32
        %c0_i32_35 = arith.constant 0 : i32
        %63 = arith.addi %c0_i32_35, %62 : i32
        %64 = arith.addi %60, %63 : i32
        %65 = arith.index_cast %64 : i32 to index
        %66 = memref.load %arg2[%65] : memref<16xi32, #tpu.memory_space<smem>>
        %c0_i32_36 = arith.constant 0 : i32
        %67 = arith.addi %c0_i32_36, %63 : i32
        %c0_i32_37 = arith.constant 0 : i32
        %c0_i32_38 = arith.constant 0 : i32
        %68 = tpu.memref_slice %arg3[%66, %c0_i32_38] : memref<20x128xf32, #tpu.memory_space<any>> -> memref<1x128xf32, #tpu.memory_space<any>>
        %69 = tpu.memref_squeeze %68 : memref<1x128xf32, #tpu.memory_space<any>> -> memref<128xf32, #tpu.memory_space<any>>
        %c0_i32_39 = arith.constant 0 : i32
        %70 = tpu.memref_slice %arg8[%67, %c0_i32_39] : memref<16x128xf32, #tpu.memory_space<vmem>> -> memref<1x128xf32, #tpu.memory_space<vmem>>
        %71 = tpu.memref_squeeze %70 : memref<1x128xf32, #tpu.memory_space<vmem>> -> memref<128xf32, #tpu.memory_space<vmem>>
        %72 = tpu.memref_slice %arg9[%c0_i32_37] : memref<2x!tpu.dma_semaphore, #tpu.memory_space<semaphore_mem>> -> memref<1x!tpu.dma_semaphore, #tpu.memory_space<semaphore_mem>>
        %73 = tpu.memref_squeeze %72 : memref<1x!tpu.dma_semaphore, #tpu.memory_space<semaphore_mem>> -> memref<!tpu.dma_semaphore, #tpu.memory_space<semaphore_mem>>
        tpu.enqueue_dma source(%69 : memref<128xf32, #tpu.memory_space<any>>) target(%71 : memref<128xf32, #tpu.memory_space<vmem>>) target_semaphore(%73 : memref<!tpu.dma_semaphore, #tpu.memory_space<semaphore_mem>>)
      }
      %c8_i32_33 = arith.constant 8 : i32
    } else {
    }
    %c1_i32_6 = arith.constant 1 : i32
    %14 = arith.addi %arg1, %c1_i32_6 : i32
    %c1_i32_7 = arith.constant 1 : i32
    %15 = arith.cmpi slt, %14, %c1_i32_7 : i32
    %16 = arith.extui %15 : i1 to i32
    %c0_i32_8 = arith.constant 0 : i32
    %17 = arith.cmpi ne, %16, %c0_i32_8 : i32
    scf.if %17 {
      %c1_i32_28 = arith.constant 1 : i32
      %59 = arith.addi %arg1, %c1_i32_28 : i32
      %c8_i32_29 = arith.constant 8 : i32
      %60 = arith.muli %arg0, %c8_i32_29 : i32
      %c8_i32_30 = arith.constant 8 : i32
      %61 = arith.muli %59, %c8_i32_30 : i32
      %62 = arith.addi %60, %61 : i32
      %c0_i32_31 = arith.constant 0 : i32
      %c8_i32_32 = arith.constant 8 : i32
      %63 = arith.addi %c0_i32_31, %c8_i32_32 : i32
      %c1_i32_33 = arith.constant 1 : i32
      scf.for %arg10 = %c0_i32_31 to %63 step %c1_i32_33  : i32 {
        %c1_i32_35 = arith.constant 1 : i32
        %64 = arith.muli %arg10, %c1_i32_35 : i32
        %c0_i32_36 = arith.constant 0 : i32
        %65 = arith.addi %c0_i32_36, %64 : i32
        %66 = arith.addi %62, %65 : i32
        %67 = arith.index_cast %66 : i32 to index
        %68 = memref.load %arg2[%67] : memref<16xi32, #tpu.memory_space<smem>>
        %c8_i32_37 = arith.constant 8 : i32
        %69 = arith.muli %10, %c8_i32_37 : i32
        %70 = arith.addi %69, %65 : i32
        %c0_i32_38 = arith.constant 0 : i32
        %71 = tpu.memref_slice %arg3[%68, %c0_i32_38] : memref<20x128xf32, #tpu.memory_space<any>> -> memref<1x128xf32, #tpu.memory_space<any>>
        %72 = tpu.memref_squeeze %71 : memref<1x128xf32, #tpu.memory_space<any>> -> memref<128xf32, #tpu.memory_space<any>>
        %c0_i32_39 = arith.constant 0 : i32
        %73 = tpu.memref_slice %arg8[%70, %c0_i32_39] : memref<16x128xf32, #tpu.memory_space<vmem>> -> memref<1x128xf32, #tpu.memory_space<vmem>>
        %74 = tpu.memref_squeeze %73 : memref<1x128xf32, #tpu.memory_space<vmem>> -> memref<128xf32, #tpu.memory_space<vmem>>
        %75 = tpu.memref_slice %arg9[%10] : memref<2x!tpu.dma_semaphore, #tpu.memory_space<semaphore_mem>> -> memref<1x!tpu.dma_semaphore, #tpu.memory_space<semaphore_mem>>
        %76 = tpu.memref_squeeze %75 : memref<1x!tpu.dma_semaphore, #tpu.memory_space<semaphore_mem>> -> memref<!tpu.dma_semaphore, #tpu.memory_space<semaphore_mem>>
        tpu.enqueue_dma source(%72 : memref<128xf32, #tpu.memory_space<any>>) target(%74 : memref<128xf32, #tpu.memory_space<vmem>>) target_semaphore(%76 : memref<!tpu.dma_semaphore, #tpu.memory_space<semaphore_mem>>)
      }
      %c8_i32_34 = arith.constant 8 : i32
    } else {
    }
    %c8_i32 = arith.constant 8 : i32
    %18 = arith.muli %arg0, %c8_i32 : i32
    %c8_i32_9 = arith.constant 8 : i32
    %19 = arith.muli %arg1, %c8_i32_9 : i32
    %20 = arith.addi %18, %19 : i32
    %c0_i32_10 = arith.constant 0 : i32
    %c8_i32_11 = arith.constant 8 : i32
    %21 = arith.addi %c0_i32_10, %c8_i32_11 : i32
    %c1_i32_12 = arith.constant 1 : i32
    scf.for %arg10 = %c0_i32_10 to %21 step %c1_i32_12  : i32 {
      %c1_i32_28 = arith.constant 1 : i32
      %59 = arith.muli %arg10, %c1_i32_28 : i32
      %c0_i32_29 = arith.constant 0 : i32
      %60 = arith.addi %c0_i32_29, %59 : i32
      %61 = arith.addi %20, %60 : i32
      %62 = arith.index_cast %61 : i32 to index
      %63 = memref.load %arg2[%62] : memref<16xi32, #tpu.memory_space<smem>>
      %c8_i32_30 = arith.constant 8 : i32
      %64 = arith.muli %9, %c8_i32_30 : i32
      %65 = arith.addi %64, %60 : i32
      %c0_i32_31 = arith.constant 0 : i32
      %66 = tpu.memref_slice %arg3[%63, %c0_i32_31] : memref<20x128xf32, #tpu.memory_space<any>> -> memref<1x128xf32, #tpu.memory_space<any>>
      %67 = tpu.memref_squeeze %66 : memref<1x128xf32, #tpu.memory_space<any>> -> memref<128xf32, #tpu.memory_space<any>>
      %c0_i32_32 = arith.constant 0 : i32
      %68 = tpu.memref_slice %arg8[%65, %c0_i32_32] : memref<16x128xf32, #tpu.memory_space<vmem>> -> memref<1x128xf32, #tpu.memory_space<vmem>>
      %69 = tpu.memref_squeeze %68 : memref<1x128xf32, #tpu.memory_space<vmem>> -> memref<128xf32, #tpu.memory_space<vmem>>
      %70 = tpu.memref_slice %arg9[%9] : memref<2x!tpu.dma_semaphore, #tpu.memory_space<semaphore_mem>> -> memref<1x!tpu.dma_semaphore, #tpu.memory_space<semaphore_mem>>
      %71 = tpu.memref_squeeze %70 : memref<1x!tpu.dma_semaphore, #tpu.memory_space<semaphore_mem>> -> memref<!tpu.dma_semaphore, #tpu.memory_space<semaphore_mem>>
      tpu.wait_dma2 semaphore(%71 : memref<!tpu.dma_semaphore, #tpu.memory_space<semaphore_mem>>) src(%67 : memref<128xf32, #tpu.memory_space<any>>) dst(%69 : memref<128xf32, #tpu.memory_space<vmem>>)
    }
    %c8_i32_13 = arith.constant 8 : i32
    %c8_i32_14 = arith.constant 8 : i32
    %22 = arith.muli %9, %c8_i32_14 : i32
    %23 = tpu.assume_multiple %22, 8 : i32
    %24 = arith.index_cast %23 : i32 to index
    %c0 = arith.constant 0 : index
    %25 = vector.load %arg8[%24, %c0] : memref<16x128xf32, #tpu.memory_space<vmem>>, vector<8x128xf32>
    %c8_i32_15 = arith.constant 8 : i32
    %26 = arith.muli %arg1, %c8_i32_15 : i32
    %27 = tpu.assume_multiple %26, 8 : i32
    %28 = arith.index_cast %27 : i32 to index
    %c0_16 = arith.constant 0 : index
    %29 = vector.load %arg4[%28, %c0_16] : memref<8x128xf32, #tpu.memory_space<vmem>>, vector<8x128xf32>
    %30 = arith.addf %25, %29 : vector<8x128xf32>
    %cst = arith.constant dense<0.000000e+00> : vector<8xf32>
    %31 = vector.multi_reduction <add>, %30, %cst [1] : vector<8x128xf32> to vector<8xf32>
    %32 = vector.shape_cast %31 : vector<8xf32> to vector<8x1xf32>
    %cst_17 = arith.constant 3.125000e-02 : f32
    %33 = vector.broadcast %cst_17 : f32 to vector<8x1xf32>
    %34 = arith.mulf %32, %33 : vector<8x1xf32>
    %35 = vector.broadcast %34 : vector<8x1xf32> to vector<8x128xf32>
    %36 = arith.subf %30, %35 : vector<8x128xf32>
    %37 = tpu.iota {dimensions = array<i32: 1>} : vector<8x128xi32>
    %c32_i32 = arith.constant 32 : i32
    %38 = vector.broadcast %c32_i32 : i32 to vector<8x128xi32>
    %39 = arith.cmpi slt, %37, %38 : vector<8x128xi32>
    %40 = arith.mulf %36, %36 : vector<8x128xf32>
    %cst_18 = arith.constant 0.000000e+00 : f32
    %41 = vector.broadcast %cst_18 : f32 to vector<8x128xf32>
    %42 = arith.select %39, %40, %41 : vector<8x128xi1>, vector<8x128xf32>
    %cst_19 = arith.constant dense<0.000000e+00> : vector<8xf32>
    %43 = vector.multi_reduction <add>, %42, %cst_19 [1] : vector<8x128xf32> to vector<8xf32>
    %44 = vector.shape_cast %43 : vector<8xf32> to vector<8x1xf32>
    %cst_20 = arith.constant 3.125000e-02 : f32
    %45 = vector.broadcast %cst_20 : f32 to vector<8x1xf32>
    %46 = arith.mulf %44, %45 : vector<8x1xf32>
    %cst_21 = arith.constant 9.99999996E-13 : f32
    %47 = vector.broadcast %cst_21 : f32 to vector<8x1xf32>
    %48 = arith.addf %46, %47 : vector<8x1xf32>
    %49 = math.rsqrt %48 : vector<8x1xf32>
    %50 = vector.broadcast %49 : vector<8x1xf32> to vector<8x128xf32>
    %51 = arith.mulf %36, %50 : vector<8x128xf32>
    %c0_22 = arith.constant 0 : index
    %c0_23 = arith.constant 0 : index
    %52 = vector.load %arg5[%c0_22, %c0_23] : memref<1x128xf32, #tpu.memory_space<vmem>>, vector<1x128xf32>
    %53 = vector.broadcast %52 : vector<1x128xf32> to vector<8x128xf32>
    %54 = arith.mulf %53, %51 : vector<8x128xf32>
    %c0_24 = arith.constant 0 : index
    %c0_25 = arith.constant 0 : index
    %55 = vector.load %arg6[%c0_24, %c0_25] : memref<1x128xf32, #tpu.memory_space<vmem>>, vector<1x128xf32>
    %56 = vector.broadcast %55 : vector<1x128xf32> to vector<8x128xf32>
    %57 = arith.addf %54, %56 : vector<8x128xf32>
    %c0_26 = arith.constant 0 : index
    %c0_27 = arith.constant 0 : index
    %58 = vector.load %arg7[%c0_26, %c0_27] : memref<8x128xf32, #tpu.memory_space<vmem>>, vector<8x128xf32>
    tpu.vector_store %arg7[%c0_26, %c0_27], %57 {strides = array<i32>} : memref<8x128xf32, #tpu.memory_space<vmem>>, vector<8x128xf32>,
    return
  }
  func.func @transform_1(%arg0: i32, %arg1: i32, %arg2: memref<16xi32, #tpu.memory_space<smem>>) -> (i32, i32) {
    %c0_i32 = arith.constant 0 : i32
    %c0_i32_0 = arith.constant 0 : i32
    %c0_i32_1 = arith.constant 0 : i32
    return %c0_i32, %c0_i32_0 : i32, i32
  }
  func.func @transform_2(%arg0: i32, %arg1: i32, %arg2: memref<16xi32, #tpu.memory_space<smem>>) -> (i32, i32) {
    %c0_i32 = arith.constant 0 : i32
    %c0_i32_0 = arith.constant 0 : i32
    %c0_i32_1 = arith.constant 0 : i32
    return %c0_i32, %c0_i32_0 : i32, i32
  }
  func.func @transform_3(%arg0: i32, %arg1: i32, %arg2: memref<16xi32, #tpu.memory_space<smem>>) -> (i32, i32) {
    %c0_i32 = arith.constant 0 : i32
    %c0_i32_0 = arith.constant 0 : i32
    %c0_i32_1 = arith.constant 0 : i32
    return %c0_i32, %c0_i32_0 : i32, i32
  }
  func.func @transform_4(%arg0: i32, %arg1: i32, %arg2: memref<16xi32, #tpu.memory_space<smem>>) -> (i32, i32) {
    %c1_i32 = arith.constant 1 : i32
    %0 = arith.muli %arg0, %c1_i32 : i32
    %1 = arith.addi %0, %arg1 : i32
    %c0_i32 = arith.constant 0 : i32
    %c0_i32_0 = arith.constant 0 : i32
    return %1, %c0_i32 : i32, i32
  }
}

</mosaic_0001>

<bundles_post_ra>
// kernel: tpu_custom_call.1
= control target key start
LH: loop header
LB: loop body
LE: loop exit
PB: predicated region body
PF: predicated region fallthrough
CT: control target
= control target key end

     0   :  { %s719_s21 = smov [#allocation5]   ;;  %s890_s0 = inlined_call_operand.hbm [shape: s32[16], index: 0, kind: input, shape index: {}]   ;;  %s891_s1 = inlined_call_operand.hbm [shape: f32[20,128], index: 1, kind: input, shape index: {}]   ;;  %s892_s2 = inlined_call_operand.hbm [shape: f32[8,128], index: 2, kind: input, shape index: {}]   ;;  %s893_s3 = inlined_call_operand.vmem [shape: f32[1,128], index: 3, kind: input, shape index: {}]   ;;  %s894_s4 = inlined_call_operand.vmem [shape: f32[1,128], index: 4, kind: input, shape index: {}]   ;;  %s895_s5 = inlined_call_operand.hbm [shape: f32[16,128], index: 5, kind: output, shape index: {}]  }
   0x1   :  { %897 = sst [smem:[#allocation20_spill]] %s892_s2  ;;  %s11_s20 = sshll.u32 %s890_s0, 4  ;;  %s12_s20 = int_to_ptr.hbm [resolvable:$true] %s11_s20 }
   0x2   :  { %14 = dma.hbm_to_smem %s12_s20, 16, %s719_s21, [#allocation4] }
   0x3   :  { %675 = dma.done.wait [#allocation4], 16 }
   0x4   :  { %676 = vsyncadd [#allocation4], 4294967280 }
   0x5   :  { %17 = sfence }
   0x6   :  { %18 = vsyncpa [#allocation7], 0 }
   0x7   :  { %19 = vsyncpa [#allocation8], 0 }
   0x8   :  { %21 = vsyncpa [#allocation8 + $0x1], 0  ;;  %s755_s22 = smov 0   ;;  %s757_s23 = smov 0  }
   0x9   :  { %s759_s24 = smov 0   ;;  %s761_s25 = smov 0  }
   0xa   :  { %s763_s26 = smov 0   ;;  %s765_s0 = smov 0  }
   0xb LB: > { %s444_s27 = sadd.s32 4294967295, %s709_s0   ;;  %s445_s28 = sadd.s32 4294967294, %s709_s0   ;;  %s709_s0 = sphi %s765_s0, %s27_s0   ;;  %s705_s26 = sphi %s763_s26, %s910_s26   ;;  %s701_s25 = sphi %s761_s25, %s909_s25   ;;  %s697_s24 = sphi %s759_s24, %s908_s24   ;;  %s693_s23 = sphi %s757_s23, %s907_s23   ;;  %s689_s22 = sphi %s755_s22, %s906_s22  }
   0xc   : > { %s39_s29 = sadd.s32 1, %s705_s26  ;;  %s111_s30 = sadd.s32 1, %s697_s24 }
   0xd   : > { %p41_p0 = scmp.ge.s32.totalorder %s39_s29, 2  ;;  %p121_p1 = scmp.ne.s32.totalorder %s697_s24, %s693_s23 }
   0xe   : > { %p122_p2 = scmp.eq.s32.totalorder %s444_s27, 1  ;;  %p127_p3 = scmp.ne.s32.totalorder %s693_s23, %s689_s22 }
   0xf   : > { %s912_s29 = smov (%p41_p0, %s39_s29), 0  ;;  %p128_p5 = scmp.eq.s32.totalorder %s445_s28, 1 }
  0x10   : > { %p795_p4 = por %p122_p2, %p121_p1  ;;  %s108_s7 = ssub.s32 %s705_s26, %s912_s29 }
  0x11   : > { %p446_p6 = scmp.ge.s32.totalorder %s709_s0, 1  ;;  %p109_p7 = scmp.eq.s32.totalorder %s108_s7, 0 }
  0x12   : > { %p802_p8 = por %p128_p5, %p127_p3  ;;  %p135_p9 = scmp.lt.s32.totalorder %s709_s0, 3 }
  0x13   : > { %s808_s9 = scalar_select %p109_p7, %s697_s24, %s111_s30  }
  0x14   : > { %p136_p10 = pnand %p446_p6, %p135_p9  ;;  %p476_p11 = scmp.eq.s32.totalorder %s444_s27, 0 }
  0x15   : > { %s900_s2 = sld [smem:[#allocation20_spill]]  ;;  %s720_s13 = smov [#allocation6]  }
  0x16   : > { %p468_p12 = pneg %p136_p10  ;;  %s149_s14 = sshll.u32 %s720_s13, 4  ;;  %s150_s14 = int_to_ptr.vmem [resolvable:$true] %s149_s14 }
  0x18   : > { %p469_p13 = pnand %p476_p11, %p468_p12  ;;  %168 = sbr.rel (%p136_p10) target bundleno = 346 (0x15a), region = 32 }
  0x1b   : > { %s147_s12 = sshll.u32 %s900_s2, 4  ;;  %s148_s12 = int_to_ptr.hbm [resolvable:$true] %s147_s12 }
  0x1c   : > { %471 = dma.hbm_to_vmem [thread:$0]  (!%p469_p13), %s148_s12, 128, %s150_s14, [#allocation7]  }
  0x1d   : > { %678 = dma.done.wait (%p476_p11), [#allocation7], 128  }
  0x1e   : > { %680 = vsyncadd (%p476_p11), [#allocation7], 4294967168  ;;  %s896_s15 = sand.u32 1, %s693_s23   ;;  %s820_s19 = smov 0  }
  0x1f   : > { %s817_s17 = sshll.u32 %s896_s15, 3 }
  0x20 LB: >> { %s901_s16 = sshll.u32 %s701_s25, 3  ;;  %s216_s27 = scalar_lea.vmem [#allocation2], %s713_s19  ;;  %s713_s19 = sphi %s820_s19, %s212_s19  }
  0x21   : >> { %s213_s20 = sadd.s32 %s713_s19, %s901_s16  ;;  %s226_s28 = sshll.u32 %s216_s27, 4  ;;  %s227_s28 = int_to_ptr.vmem [resolvable:$true] %s226_s28 }
  0x22   : >> { %s214_s21 = sld [smem:[#allocation5 + %s213_s20]]  ;;  %s595_s18 = scalar_lea.hbm %s891_s1, 24 }
  0x28   : >> { %s215_s10 = scalar_lea.hbm %s891_s1, %s214_s21 }
  0x29   : >> { %s224_s11 = sshll.u32 %s215_s10, 4  ;;  %s225_s11 = int_to_ptr.hbm [resolvable:$true] %s224_s11 }
  0x2a   : >> { %s591_s12 = sshra.s32 %s225_s11, 4  ;;  %s592_s12 = int_to_ptr.hbm [resolvable:$true] %s591_s12 }
  0x2b   : >> { %s593_s13 = scalar_lea.hbm %s592_s12, 1  ;;  %p596_p1 = scmp.lt.s32.totalorder %s592_s12, %s891_s1 }
  0x2c   : >> { %p594_p0 = scmp.ne.s32.totalorder %s592_s12, %s593_s13  ;;  %p597_p2 = scmp.lt.s32.totalorder %s595_s18, %s593_s13 }
  0x2e   : >> { %p598_p3 = por %p597_p2, %p596_p1 }
  0x30   : >> { %p599_p5 = pnand %p598_p3, %p594_p0 }
  0x32   : >> { %602 = shalt.err (!%p599_p5)  }
  0x33   : >> { %s603_s20 = sshra.s32 %s227_s28, 4  ;;  %s721_s27 = smov [#allocation2]   ;;  %s604_s20 = int_to_ptr.vmem [resolvable:$true] %s603_s20 }
  0x34   : >> { %s605_s21 = scalar_lea.vmem %s604_s20, 1  ;;  %s607_s30 = scalar_lea.vmem %s721_s27, 16 }
  0x35   : >> { %p606_p6 = scmp.ne.s32.totalorder %s604_s20, %s605_s21  ;;  %p608_p7 = scmp.lt.s32.totalorder %s604_s20, [#allocation2] }
  0x36   : >> { %p609_p9 = scmp.lt.s32.totalorder %s607_s30, %s605_s21 }
  0x38   : >> { %p610_p10 = por %p609_p9, %p608_p7 }
  0x3a   : >> { %p611_p11 = pnand %p610_p10, %p606_p6 }
  0x3c   : >> { %614 = shalt.err (!%p611_p11)  }
  0x3d   : >> { %229 = dma.hbm_to_vmem [thread:$0]  %s225_s11, 16, %s227_s28, [#allocation3] }
  0x3e   : >> { %s212_s19 = sadd.s32 1, %s713_s19  }
  0x3f   : >> { %p209_p12 = scmp.ge.s32.totalorder %s212_s19, 8  }
  0x40   : > { %s715_s2 = smov (%p209_p12), 0  }
  0x41   : > { %211 = sbr.rel (!%p209_p12) target bundleno = 32 (0x20), region = 115 }
  0x46 LB: >> { %681 = dma.done.wait [#allocation3], 16  ;;  %s717_s2 = sphi %s715_s2, %s272_s2  }
  0x47   : >> { %682 = vsyncadd [#allocation3], 4294967280  ;;  %s272_s2 = sadd.s32 1, %s717_s2  }
  0x48   : >> { %p269_p13 = scmp.ge.s32.totalorder %s272_s2, 8  }
  0x49   : > { %v280_v0 = vld [vmem:[#allocation2] sm:$0xff] (%p269_p13)  ;;  %v282_v1 = vld [vmem:[#allocation6] sm:$0xff] (%p269_p13)  ;;  %v288_v3 = vlaneseq (%p269_p13)  ;;  %s902_s18 = sshll.u32 (%p269_p13), %s701_s25, 3  ;;  %s903_s12 = scalar_lea.vmem (%p269_p13), [#allocation9], %s817_s17 }
  0x4a   : > { %271 = sbr.rel (!%p269_p13) target bundleno = 70 (0x46), region = 137  ;;  %v283_v2 = vadd.f32 (%p269_p13), %v282_v1, %v280_v0  ;;  %v545_v19 = vld [vmem:[%s893_s3] ss:$0 sm:$0xff] (%p269_p13)  ;;  %s331_s7 = scalar_lea.hbm (%p269_p13), %s895_s5, %s902_s18 }
  0x4b   : > { %v289_v5 = vand.u32 (%p269_p13), 127, %v288_v3  ;;  %v546_v22 = vld [vmem:[%s894_s4] ss:$0 sm:$0xff] (%p269_p13)  ;;  %s333_s13 = sshll.u32 (%p269_p13), %s903_s12, 4  ;;  %s335_s14 = sshll.u32 (%p269_p13), %s331_s7, 4  ;;  %s334_s13 = int_to_ptr.vmem [resolvable:$true] %s333_s13  ;;  %s336_s14 = int_to_ptr.hbm [resolvable:$true] %s335_s14 }
  0x4c   : > { %284 = vadd.xlane.f32.xlu0 (%p269_p13), %v283_v2  ;;  %s904_s20 = smov (%p269_p13), %s903_s12  ;;  %s905_s25 = sand.u32 (%p269_p13), 1, %s693_s23  }
  0x4d   : > { %vm290_vm0 = vcmp.lt.s32.totalorder (%p269_p13), %v289_v5, 32  ;;  %s320_s21 = scalar_lea.sflag (%p269_p13), [#allocation8], %s905_s25  ;;  %s629_s27 = sshra.s32 (%p269_p13), %s336_s14, 4  ;;  %s630_s27 = int_to_ptr.hbm [resolvable:$true] %s629_s27 }
  0x4e   : > { %s631_s30 = scalar_lea.hbm (%p269_p13), %s630_s27, 8  ;;  %s635_s16 = scalar_lea.hbm (%p269_p13), %s895_s5, 16 }
  0x4f   : > { %p632_p0 = scmp.ne.s32.totalorder %s630_s27, %s631_s30  ;;  %p636_p3 = scmp.lt.s32.totalorder %s630_s27, %s895_s5 }
  0x50   : > { %p637_p5 = scmp.lt.s32.totalorder %s635_s16, %s631_s30 }
  0x51   : > { %p633_p1 = pnand %p632_p0, %p795_p4 }
  0x52   : > { %p638_p6 = por %p637_p5, %p636_p3 }
  0x53   : > { %p634_p2 = pneg %p633_p1 }
  0x55   : > { %p639_p7 = pnand %p638_p6, %p634_p2 }
  0xbf   : > { %v285_v4 = vpop.xlane.xlu0 %284 }
  0xc0   : > { %v286_v6 = vmul.f32 0.03125, %v285_v4 }
  0xc2   : > { %v287_v7 = vsub.f32 %v283_v2, %v286_v6 }
  0xc4   : > { %v291_v8 = vmul.f32 %v287_v7, %v287_v7 }
  0xc6   : > { %v292_v9 = vsel %vm290_vm0, %v291_v8, 0.0 }
  0xc7   : > { %293 = vadd.xlane.f32.xlu0 %v292_v9 }
 0x13a   : > { %v294_v10 = vpop.xlane.xlu0 %293 }
 0x13b   : > { %v295_v11 = vmul.f32 0.03125, %v294_v10 }
 0x13d   : > { %v296_v12 = vadd.f32 1e-12, %v295_v11 }
 0x13f   : > { %547 = vrsqrt.f32 %v296_v12  ;;  %vm303_vm2 = vweird.f32 %v296_v12 }
 0x145   : > { %v548_v13 = vpop.eup %547 }
 0x146   : > { %v298_v14 = vmul.f32 %v548_v13, %v296_v12  ;;  %vm304_vm1 = vweird.f32 %v548_v13 }
 0x147   : > { %vm305_vm3 = vmor %vm303_vm2, %vm304_vm1 }
 0x148   : > { %v299_v15 = vmul.f32 %v548_v13, %v298_v14 }
 0x14a   : > { %v300_v16 = vmul.f32 0.5, %v299_v15 }
 0x14c   : > { %v301_v17 = vsub.f32 1.5, %v300_v16 }
 0x14e   : > { %v302_v18 = vmul.f32 %v548_v13, %v301_v17 }
 0x150   : > { %v306_v20 = vsel %vm305_vm3, %v548_v13, %v302_v18 }
 0x151   : > { %v307_v21 = vmul.f32 %v306_v20, %v287_v7 }
 0x153   : > { %v312_v23 = vmul.f32 %v545_v19, %v307_v21 }
 0x155   : > { %v317_v24 = vadd.f32 %v546_v22, %v312_v23 }
 0x157   : > { %318 = vst [vmem:[%s904_s20] sm:$0xff] %v317_v24 }
 0x158   : > { %642 = shalt.err (!%p639_p7)
}
 0x159   : > { %466 = dma.vmem_to_hbm [thread:$0]  (%p795_p4), %s334_s13, 128, %s336_s14, %s320_s21  }
 0x15a PF: > { %p478_p9 = scmp.ge.s32.totalorder %s709_s0, 2  ;;  %s347_s17 = sand.u32 1, %s689_s22  }
 0x15b   : > { %s348_s28 = scalar_lea.sflag [#allocation8], %s347_s17 }
 0x15c   : > { %p473_p10 = pnand %p478_p9, %p802_p8 }
 0x15e   : > { %p474_p11 = pneg %p473_p10 }
 0x160   : > { %684 = dma.done.wait (%p474_p11), %s348_s28, 128  }
 0x161   : > { %686 = vsyncadd (%p474_p11), %s348_s28, 4294967168  ;;  %s27_s0 = sadd.s32 1, %s709_s0   ;;  %s906_s22 = smov %s693_s23 }
 0x162   : > { %p24_p12 = scmp.ge.s32.totalorder %s27_s0, 4   ;;  %s907_s23 = smov %s697_s24 }
 0x163   : > { %s908_s24 = smov %s808_s9  ;;  %s909_s25 = smov %s705_s26 }
 0x164   : > { %s910_s26 = smov %s912_s29  ;;  %26 = sbr.rel (!%p24_p12) target bundleno = 11 (0xb), region = 148 }
 0x169   :  { %354 = vsyncpa [#allocation7], 1 }
 0x16a   :  { %356 = vsyncpa [#allocation7 + $0x1], 1 }
 0x16b   :  { %357 = vsyncpa [#allocation8], 1 }
 0x16c   :  { %359 = vsyncpa [#allocation8 + $0x1], 1 }
 0x16d   :  { %360 = vsyncmov [#allocation3] }
 0x170   :  { %s361_s6 = vpop.sfrf %360 }
 0x171   :  { %p458_p4 = scmp.ne.s32.totalorder %s361_s6, 0 }
 0x173   :  { %365 = shalt.err (%p458_p4)  }
 0x174   :  { %367 = vsyncmov [#allocation3 + $0x1] }
 0x177   :  { %s368_s8 = vpop.sfrf %367 }
 0x178   :  { %p459_p8 = scmp.ne.s32.totalorder %s368_s8, 0 }
 0x17a   :  { %372 = shalt.err (%p459_p8)  }

</bundles_post_ra>
